<compile_context>
chip_gen: v7x
topology: tpu7x:2x2x1
jax: 0.10.0
libtpu: 0.0.40
codegen_flags: <defaults>
</compile_context>

<pallas_src>
import jax
import jax.numpy as jnp
import numpy as np
from jax.experimental import pallas as pl
from jax.experimental.pallas import tpu as pltpu


# ----------------------------------------------------------------------------
# Pallas kernels: out = PReLU(a @ w + b) [+ res | - res]
# ----------------------------------------------------------------------------
def _mm_prelu_kernel(a_ref, w_ref, b_ref, alpha_ref, o_ref):
    acc = jnp.dot(a_ref[...], w_ref[...], preferred_element_type=jnp.float32)
    acc = acc + b_ref[...]
    alpha = alpha_ref[0]
    acc = jnp.where(acc >= 0.0, acc, alpha * acc)
    o_ref[...] = acc.astype(o_ref.dtype)


def _mm_prelu_add_kernel(a_ref, w_ref, b_ref, alpha_ref, res_ref, o_ref):
    acc = jnp.dot(a_ref[...], w_ref[...], preferred_element_type=jnp.float32)
    acc = acc + b_ref[...]
    alpha = alpha_ref[0]
    acc = jnp.where(acc >= 0.0, acc, alpha * acc)
    o_ref[...] = (acc + res_ref[...].astype(jnp.float32)).astype(o_ref.dtype)


def _mm_prelu_sub_kernel(a_ref, w_ref, b_ref, alpha_ref, res_ref, o_ref):
    acc = jnp.dot(a_ref[...], w_ref[...], preferred_element_type=jnp.float32)
    acc = acc + b_ref[...]
    alpha = alpha_ref[0]
    acc = jnp.where(acc >= 0.0, acc, alpha * acc)
    o_ref[...] = (acc - res_ref[...].astype(jnp.float32)).astype(o_ref.dtype)


_SMEM_SPEC = pl.BlockSpec(memory_space=pltpu.MemorySpace.SMEM)


# ----------------------------------------------------------------------------
# Pallas wrapper (shared by all three stages)
# ----------------------------------------------------------------------------
def _fused_matmul(patches, w_mat, bias_row, alpha1, res, res_sign, tm, out_dtype):
    """out (Mp, N) = PReLU(patches (Mp,K) @ w (K,N) + b) [+/- res]."""
    mp, kk = patches.shape
    nn = w_mat.shape[1]

    in_specs = [
        pl.BlockSpec((tm, kk), lambda i: (i, 0)),   # activation rows (tiled)
        pl.BlockSpec((kk, nn), lambda i: (0, 0)),   # weight (resident, lane-dense)
        pl.BlockSpec((1, nn), lambda i: (0, 0)),    # bias row
        _SMEM_SPEC,                                 # PReLU slope (scalar, SMEM)
    ]
    args = [patches, w_mat, bias_row, alpha1]
    if res is None:
        kernel = _mm_prelu_kernel
    else:
        kernel = _mm_prelu_add_kernel if res_sign > 0 else _mm_prelu_sub_kernel
        in_specs.append(pl.BlockSpec((tm, nn), lambda i: (i, 0)))   # fused residual
        args.append(res)

    grid_spec = pltpu.PrefetchScalarGridSpec(
        num_scalar_prefetch=0,
        grid=(mp // tm,),
        in_specs=in_specs,
        out_specs=pl.BlockSpec((tm, nn), lambda i: (i, 0)),
    )
    return pl.pallas_call(
        kernel,
        out_shape=jax.ShapeDtypeStruct((mp, nn), out_dtype),
        grid_spec=grid_spec,
        compiler_params=pltpu.CompilerParams(dimension_semantics=("parallel",)),
    )(*args)


# ----------------------------------------------------------------------------
# Tiling / padding helpers
# ----------------------------------------------------------------------------
def _row_tiling(m, max_tile=512):
    """Row tile (sublane-aligned) with >= 2 grid steps when possible (v7x)."""
    mp = ((m + 7) // 8) * 8
    tm = min(max_tile, mp)
    if mp // tm < 2 and mp >= 16:
        tm = max(8, ((mp // 2) // 8) * 8)
    mp = ((mp + tm - 1) // tm) * tm
    return mp, tm


def _pad_rows(a, rows):
    if rows == a.shape[0]:
        return a
    return jnp.pad(a, ((0, rows - a.shape[0]), (0, 0)))


def _pad2d(a, rows, cols):
    return jnp.pad(a, ((0, rows - a.shape[0]), (0, cols - a.shape[1])))


# ----------------------------------------------------------------------------
# JAX glue: patch gather, sub-pixel weights, pixel shuffle
# ----------------------------------------------------------------------------
def _im2col(x_nhwc, k, stride, pad):
    n, h, w, c = x_nhwc.shape
    xp = jnp.pad(x_nhwc, ((0, 0), (pad, pad), (pad, pad), (0, 0)))
    oh = (h + 2 * pad - k) // stride + 1
    ow = (w + 2 * pad - k) // stride + 1
    ih = (jnp.arange(oh) * stride)[:, None] + jnp.arange(k)[None, :]
    iw = (jnp.arange(ow) * stride)[:, None] + jnp.arange(k)[None, :]
    # (N, OH, OW, K, K, C): rows ordered (n, oy, ox), cols ordered (kh, kw, c)
    patches = xp[:, ih[:, None, :, None], iw[None, :, None, :], :]
    return patches.reshape(n * oh * ow, k * k * c)


def _deconv_phase_weight(wt):
    """torch ConvTranspose2d(k=8,s=4,p=2) weight (Ci,Co,8,8) -> (9*Ci, 16*Co).

    out[n, 4*qy+ry, 4*qx+rx, co] =
        sum_{dy,dx,ci} x_pad1[n, qy+dy, qx+dx, ci] * Wp[(dy,dx,ci), (ry,rx,co)]
    with kernel tap kh = ry + 6 - 4*dy (zero where out of range)."""
    ci, co = wt.shape[0], wt.shape[1]
    d = jnp.arange(3)
    r = jnp.arange(4)
    kh = r[None, :] + 6 - 4 * d[:, None]                      # (dy, ry)
    valid = (kh >= 0) & (kh < 8)
    khc = jnp.clip(kh, 0, 7)
    g = wt[:, :, khc[:, :, None, None], khc[None, None, :, :]]  # (Ci,Co,dy,ry,dx,rx)
    mask = (valid[:, :, None, None] & valid[None, None, :, :]).astype(wt.dtype)
    g = g * mask[None, None]
    return jnp.transpose(g, (2, 4, 0, 3, 5, 1)).reshape(9 * ci, 16 * co)


def _phase_to_nhwc(y_phase, n, h, w, c):
    """(n*h*w, 16*c) phase layout (cols ordered ry,rx,c) -> (n, 4h, 4w, c)."""
    t = y_phase.reshape(n, h, w, 4, 4, c)
    t = jnp.transpose(t, (0, 1, 3, 2, 4, 5))
    return t.reshape(n, 4 * h, 4 * w, c)


# ----------------------------------------------------------------------------
# One-time weight preprocessing (hoisted out of the per-call forward)
# ----------------------------------------------------------------------------
def prepare_up_block_params(params):
    c = params["b1"].shape[0]
    assert c % 8 == 0, "num_filter must be a multiple of 8 for lane-dense 16*C"
    cp = ((c + 127) // 128) * 128                 # padded output-channel dim (>=128)

    w1p = _deconv_phase_weight(params["w1"]).astype(jnp.bfloat16)      # (9c, 16c)
    b1p = jnp.tile(params["b1"], 16).reshape(1, 16 * c).astype(jnp.float32)

    # Conv2d weight (Cout,Cin,Kh,Kw) -> (Kh*Kw*Cin, Cout) matching im2col cols,
    # zero-padded along Cout to a lane-dense width.
    w2m = jnp.transpose(params["w2"], (2, 3, 1, 0)).reshape(64 * c, c)
    w2m = _pad2d(w2m, 64 * c, cp).astype(jnp.bfloat16)                 # (64c, cp)
    b2p = jnp.pad(params["b2"], (0, cp - c)).reshape(1, cp).astype(jnp.float32)

    w3p = _deconv_phase_weight(params["w3"]).astype(jnp.bfloat16)      # (9c, 16c)
    b3p = jnp.tile(params["b3"], 16).reshape(1, 16 * c).astype(jnp.float32)

    def _a(v):
        return jnp.asarray(v, jnp.float32).reshape(1)

    return {"w1p": w1p, "b1p": b1p, "a1": _a(params["a1"]),
            "w2m": w2m, "b2p": b2p, "a2": _a(params["a2"]),
            "w3p": w3p, "b3p": b3p, "a3": _a(params["a3"]),
            "cp": cp}


# ----------------------------------------------------------------------------
# UpBlock forward (NCHW in / NCHW out, like PyTorch)
# ----------------------------------------------------------------------------
@jax.jit
def up_block_forward(x_nchw, prep):
    n, c, h, w = x_nchw.shape
    x = jnp.transpose(x_nchw, (0, 2, 3, 1))                  # NHWC f32
    xb = x.astype(jnp.bfloat16)
    m = n * h * w
    mp, tm = _row_tiling(m)
    cp = prep["w2m"].shape[1]

    # --- stage 1: h0 = PReLU(ConvT(x)), sub-pixel phase layout, bf16 ---------
    p1 = _pad_rows(_im2col(xb, 3, 1, 1), mp)                 # (mp, 9c) bf16
    h0p = _fused_matmul(p1, prep["w1p"], prep["b1p"], prep["a1"],
                        None, 0, tm, jnp.bfloat16)           # (mp, 16c) bf16

    # --- stage 2: d0 = PReLU(Conv(h0)) - x, row-major (n,oy,ox) rows, bf16 ---
    h0 = _phase_to_nhwc(h0p[:m], n, h, w, c)                 # (n, 4h, 4w, c) bf16
    # TODO(synk): the stride-4 im2col is still an XLA gather materialized in
    # HBM (4x read amplification); in-kernel band-DMA patch assembly from the
    # h0 image is the remaining bandwidth optimization.
    p2 = _pad_rows(_im2col(h0, 8, 4, 2), mp)                 # (mp, 64c) bf16
    xr = _pad2d(xb.reshape(m, c), mp, cp)                    # (mp, cp) bf16 residual
    d0f = _fused_matmul(p2, prep["w2m"], prep["b2p"], prep["a2"],
                        xr, -1, tm, jnp.bfloat16)            # (mp, cp) bf16
    d0 = d0f[:m, :c].reshape(n, h, w, c)                     # no transpose needed

    # --- stage 3: out = PReLU(ConvT(d0)) + h0, phase layout, f32 -------------
    p3 = _pad_rows(_im2col(d0, 3, 1, 1), mp)                 # (mp, 9c) bf16
    outp = _fused_matmul(p3, prep["w3p"], prep["b3p"], prep["a3"],
                         h0p, +1, tm, jnp.float32)           # (mp, 16c) f32

    # TODO(synk): fuse this pixel-shuffle / NCHW transpose into the stage-3
    # out_spec (tm aligned to w) to avoid one more full-activation HBM pass.
    out = _phase_to_nhwc(outp[:m], n, h, w, c)
    return jnp.transpose(out, (0, 3, 1, 2))                  # NCHW


# ----------------------------------------------------------------------------
# Pure-JAX (XLA conv) reference for validation
# ----------------------------------------------------------------------------
def _ref_prelu(y, a):
    return jnp.where(y >= 0.0, y, a * y)


def _ref_conv(x, w, b, a, k=8, stride=4, pad=2):
    w_hwio = jnp.transpose(w, (2, 3, 1, 0))
    y = jax.lax.conv_general_dilated(
        x, w_hwio, (stride, stride), ((pad, pad), (pad, pad)),
        dimension_numbers=("NHWC", "HWIO", "NHWC"))
    return _ref_prelu(y + b, a)


def _ref_deconv(x, wt, b, a, k=8, stride=4, pad=2):
    w_hwio = jnp.transpose(jnp.flip(wt, (2, 3)), (2, 3, 0, 1))
    y = jax.lax.conv_general_dilated(
        x, w_hwio, (1, 1), ((k - 1 - pad,) * 2, (k - 1 - pad,) * 2),
        lhs_dilation=(stride, stride),
        dimension_numbers=("NHWC", "HWIO", "NHWC"))
    return _ref_prelu(y + b, a)


def up_block_reference(x_nchw, p):
    x = jnp.transpose(x_nchw, (0, 2, 3, 1))
    h0 = _ref_deconv(x, p["w1"], p["b1"], p["a1"])
    l0 = _ref_conv(h0, p["w2"], p["b2"], p["a2"])
    h1 = _ref_deconv(l0 - x, p["w3"], p["b3"], p["a3"])
    return jnp.transpose(h1 + h0, (0, 3, 1, 2))


# ----------------------------------------------------------------------------
# main
# ----------------------------------------------------------------------------
if __name__ == "__main__":
    N, C, H, W = 2, 8, 8, 8          # small NCHW input (16*C = 128 phase lanes)
    K = 8

    key = jax.random.PRNGKey(0)
    ks = jax.random.split(key, 7)
    scale = 0.05
    params = {
        # ConvTranspose2d weight layout: (Cin, Cout, Kh, Kw)
        "w1": scale * jax.random.normal(ks[0], (C, C, K, K), jnp.float32),
        "b1": scale * jax.random.normal(ks[1], (C,), jnp.float32),
        "a1": jnp.float32(0.25),      # nn.PReLU() default slope
        # Conv2d weight layout: (Cout, Cin, Kh, Kw)
        "w2": scale * jax.random.normal(ks[2], (C, C, K, K), jnp.float32),
        "b2": scale * jax.random.normal(ks[3], (C,), jnp.float32),
        "a2": jnp.float32(0.25),
        "w3": scale * jax.random.normal(ks[4], (C, C, K, K), jnp.float32),
        "b3": scale * jax.random.normal(ks[5], (C,), jnp.float32),
        "a3": jnp.float32(0.25),
    }
    x = jax.random.normal(ks[6], (N, C, H, W), jnp.float32)

    prep = prepare_up_block_params(params)   # one-time weight preprocessing
    out = jax.block_until_ready(up_block_forward(x, prep))
    assert out.shape == (N, C, 4 * H, 4 * W), out.shape

    ref = jax.block_until_ready(up_block_reference(x, params))
    # bf16 MXU operands + bf16 inter-stage activations -> loosened tolerance
    # vs the f32 XLA reference.
    np.testing.assert_allclose(np.asarray(out), np.asarray(ref),
                               rtol=3e-2, atol=3e-2)

    print("KERNEL_OK")
</pallas_src>

<mosaic_0001>
module attributes {stable_mosaic.version = 11 : i64} {
  func.func @_mm_prelu_kernel(%arg0: i32, %arg1: memref<64x72xbf16, #tpu.memory_space<vmem>>, %arg2: memref<72x128xbf16, #tpu.memory_space<vmem>>, %arg3: memref<1x128xf32, #tpu.memory_space<vmem>>, %arg4: memref<1xf32, #tpu.memory_space<smem>>, %arg5: memref<64x128xbf16, #tpu.memory_space<vmem>>) attributes {dimension_semantics = [#tpu.dimension_semantics<parallel>], iteration_bounds = array<i64: 2>, scalar_prefetch = 0 : i64, scratch_operands = 0 : i64, tpu.core_type = #tpu.core_type<tc>, window_params = [{transform_indices = @transform_0, window_bounds = array<i64: 64, 72>}, {pipeline_mode = #tpu.pipeline_mode<synchronous>, transform_indices = @transform_1, window_bounds = array<i64: 72, 128>}, {pipeline_mode = #tpu.pipeline_mode<synchronous>, transform_indices = @transform_2, window_bounds = array<i64: 1, 128>}, {transform_indices = @transform_3, window_bounds = array<i64: 1>}, {transform_indices = @transform_4, window_bounds = array<i64: 64, 128>}]} {
    %c0 = arith.constant 0 : index
    %c0_0 = arith.constant 0 : index
    %0 = vector.load %arg1[%c0, %c0_0] : memref<64x72xbf16, #tpu.memory_space<vmem>>, vector<64x72xbf16>
    %c0_1 = arith.constant 0 : index
    %c0_2 = arith.constant 0 : index
    %1 = vector.load %arg2[%c0_1, %c0_2] : memref<72x128xbf16, #tpu.memory_space<vmem>>, vector<72x128xbf16>
    %cst = arith.constant dense<0.000000e+00> : vector<64x128xf32>
    %2 = tpu.matmul %0, %1, %cst {dimension_numbers = #tpu.dot_dimension_numbers<[1], [0], [0], [1], [0, 0, 1, 1], [], []>} : vector<64x72xbf16>, vector<72x128xbf16>, vector<64x128xf32> -> vector<64x128xf32>
    %c0_3 = arith.constant 0 : index
    %c0_4 = arith.constant 0 : index
    %3 = vector.load %arg3[%c0_3, %c0_4] : memref<1x128xf32, #tpu.memory_space<vmem>>, vector<1x128xf32>
    %4 = vector.broadcast %3 : vector<1x128xf32> to vector<64x128xf32>
    %5 = arith.addf %2, %4 : vector<64x128xf32>
    %c0_5 = arith.constant 0 : index
    %6 = memref.load %arg4[%c0_5] : memref<1xf32, #tpu.memory_space<smem>>
    %cst_6 = arith.constant 0.000000e+00 : f32
    %7 = vector.broadcast %cst_6 : f32 to vector<64x128xf32>
    %8 = arith.cmpf oge, %5, %7 : vector<64x128xf32>
    %9 = vector.broadcast %6 : f32 to vector<64x128xf32>
    %10 = arith.mulf %9, %5 : vector<64x128xf32>
    %11 = arith.select %8, %5, %10 : vector<64x128xi1>, vector<64x128xf32>
    %12 = arith.truncf %11 : vector<64x128xf32> to vector<64x128xbf16>
    %c0_7 = arith.constant 0 : index
    %c0_8 = arith.constant 0 : index
    %13 = vector.load %arg5[%c0_7, %c0_8] : memref<64x128xbf16, #tpu.memory_space<vmem>>, vector<64x128xbf16>
    tpu.vector_store %arg5[%c0_7, %c0_8], %12 {strides = array<i32>} : memref<64x128xbf16, #tpu.memory_space<vmem>>, vector<64x128xbf16>,
    return
  }
  func.func @transform_0(%arg0: i32) -> (i32, i32) {
    %c0_i32 = arith.constant 0 : i32
    %c0_i32_0 = arith.constant 0 : i32
    return %arg0, %c0_i32 : i32, i32
  }
  func.func @transform_1(%arg0: i32) -> (i32, i32) {
    %c0_i32 = arith.constant 0 : i32
    %c0_i32_0 = arith.constant 0 : i32
    %c0_i32_1 = arith.constant 0 : i32
    return %c0_i32, %c0_i32_0 : i32, i32
  }
  func.func @transform_2(%arg0: i32) -> (i32, i32) {
    %c0_i32 = arith.constant 0 : i32
    %c0_i32_0 = arith.constant 0 : i32
    %c0_i32_1 = arith.constant 0 : i32
    return %c0_i32, %c0_i32_0 : i32, i32
  }
  func.func @transform_3(%arg0: i32) -> i32 {
    %c0_i32 = arith.constant 0 : i32
    %c0_i32_0 = arith.constant 0 : i32
    return %c0_i32 : i32
  }
  func.func @transform_4(%arg0: i32) -> (i32, i32) {
    %c0_i32 = arith.constant 0 : i32
    %c0_i32_0 = arith.constant 0 : i32
    return %arg0, %c0_i32 : i32, i32
  }
}

module attributes {stable_mosaic.version = 11 : i64} {
  func.func @_mm_prelu_sub_kernel(%arg0: i32, %arg1: memref<64x512xbf16, #tpu.memory_space<vmem>>, %arg2: memref<512x128xbf16, #tpu.memory_space<vmem>>, %arg3: memref<1x128xf32, #tpu.memory_space<vmem>>, %arg4: memref<1xf32, #tpu.memory_space<smem>>, %arg5: memref<64x128xbf16, #tpu.memory_space<vmem>>, %arg6: memref<64x128xbf16, #tpu.memory_space<vmem>>) attributes {dimension_semantics = [#tpu.dimension_semantics<parallel>], iteration_bounds = array<i64: 2>, scalar_prefetch = 0 : i64, scratch_operands = 0 : i64, tpu.core_type = #tpu.core_type<tc>, window_params = [{transform_indices = @transform_0, window_bounds = array<i64: 64, 512>}, {pipeline_mode = #tpu.pipeline_mode<synchronous>, transform_indices = @transform_1, window_bounds = array<i64: 512, 128>}, {pipeline_mode = #tpu.pipeline_mode<synchronous>, transform_indices = @transform_2, window_bounds = array<i64: 1, 128>}, {transform_indices = @transform_3, window_bounds = array<i64: 1>}, {transform_indices = @transform_4, window_bounds = array<i64: 64, 128>}, {transform_indices = @transform_5, window_bounds = array<i64: 64, 128>}]} {
    %c0 = arith.constant 0 : index
    %c0_0 = arith.constant 0 : index
    %0 = vector.load %arg1[%c0, %c0_0] : memref<64x512xbf16, #tpu.memory_space<vmem>>, vector<64x512xbf16>
    %c0_1 = arith.constant 0 : index
    %c0_2 = arith.constant 0 : index
    %1 = vector.load %arg2[%c0_1, %c0_2] : memref<512x128xbf16, #tpu.memory_space<vmem>>, vector<512x128xbf16>
    %cst = arith.constant dense<0.000000e+00> : vector<64x128xf32>
    %2 = tpu.matmul %0, %1, %cst {dimension_numbers = #tpu.dot_dimension_numbers<[1], [0], [0], [1], [0, 0, 1, 1], [], []>} : vector<64x512xbf16>, vector<512x128xbf16>, vector<64x128xf32> -> vector<64x128xf32>
    %c0_3 = arith.constant 0 : index
    %c0_4 = arith.constant 0 : index
    %3 = vector.load %arg3[%c0_3, %c0_4] : memref<1x128xf32, #tpu.memory_space<vmem>>, vector<1x128xf32>
    %4 = vector.broadcast %3 : vector<1x128xf32> to vector<64x128xf32>
    %5 = arith.addf %2, %4 : vector<64x128xf32>
    %c0_5 = arith.constant 0 : index
    %6 = memref.load %arg4[%c0_5] : memref<1xf32, #tpu.memory_space<smem>>
    %cst_6 = arith.constant 0.000000e+00 : f32
    %7 = vector.broadcast %cst_6 : f32 to vector<64x128xf32>
    %8 = arith.cmpf oge, %5, %7 : vector<64x128xf32>
    %9 = vector.broadcast %6 : f32 to vector<64x128xf32>
    %10 = arith.mulf %9, %5 : vector<64x128xf32>
    %11 = arith.select %8, %5, %10 : vector<64x128xi1>, vector<64x128xf32>
    %c0_7 = arith.constant 0 : index
    %c0_8 = arith.constant 0 : index
    %12 = vector.load %arg5[%c0_7, %c0_8] : memref<64x128xbf16, #tpu.memory_space<vmem>>, vector<64x128xbf16>
    %13 = arith.extf %12 : vector<64x128xbf16> to vector<64x128xf32>
    %14 = arith.subf %11, %13 : vector<64x128xf32>
    %15 = arith.truncf %14 : vector<64x128xf32> to vector<64x128xbf16>
    %c0_9 = arith.constant 0 : index
    %c0_10 = arith.constant 0 : index
    %16 = vector.load %arg6[%c0_9, %c0_10] : memref<64x128xbf16, #tpu.memory_space<vmem>>, vector<64x128xbf16>
    tpu.vector_store %arg6[%c0_9, %c0_10], %15 {strides = array<i32>} : memref<64x128xbf16, #tpu.memory_space<vmem>>, vector<64x128xbf16>,
    return
  }
  func.func @transform_0(%arg0: i32) -> (i32, i32) {
    %c0_i32 = arith.constant 0 : i32
    %c0_i32_0 = arith.constant 0 : i32
    return %arg0, %c0_i32 : i32, i32
  }
  func.func @transform_1(%arg0: i32) -> (i32, i32) {
    %c0_i32 = arith.constant 0 : i32
    %c0_i32_0 = arith.constant 0 : i32
    %c0_i32_1 = arith.constant 0 : i32
    return %c0_i32, %c0_i32_0 : i32, i32
  }
  func.func @transform_2(%arg0: i32) -> (i32, i32) {
    %c0_i32 = arith.constant 0 : i32
    %c0_i32_0 = arith.constant 0 : i32
    %c0_i32_1 = arith.constant 0 : i32
    return %c0_i32, %c0_i32_0 : i32, i32
  }
  func.func @transform_3(%arg0: i32) -> i32 {
    %c0_i32 = arith.constant 0 : i32
    %c0_i32_0 = arith.constant 0 : i32
    return %c0_i32 : i32
  }
  func.func @transform_4(%arg0: i32) -> (i32, i32) {
    %c0_i32 = arith.constant 0 : i32
    %c0_i32_0 = arith.constant 0 : i32
    return %arg0, %c0_i32 : i32, i32
  }
  func.func @transform_5(%arg0: i32) -> (i32, i32) {
    %c0_i32 = arith.constant 0 : i32
    %c0_i32_0 = arith.constant 0 : i32
    return %arg0, %c0_i32 : i32, i32
  }
}

module attributes {stable_mosaic.version = 11 : i64} {
  func.func @_mm_prelu_add_kernel(%arg0: i32, %arg1: memref<64x72xbf16, #tpu.memory_space<vmem>>, %arg2: memref<72x128xbf16, #tpu.memory_space<vmem>>, %arg3: memref<1x128xf32, #tpu.memory_space<vmem>>, %arg4: memref<1xf32, #tpu.memory_space<smem>>, %arg5: memref<64x128xbf16, #tpu.memory_space<vmem>>, %arg6: memref<64x128xf32, #tpu.memory_space<vmem>>) attributes {dimension_semantics = [#tpu.dimension_semantics<parallel>], iteration_bounds = array<i64: 2>, scalar_prefetch = 0 : i64, scratch_operands = 0 : i64, tpu.core_type = #tpu.core_type<tc>, window_params = [{transform_indices = @transform_0, window_bounds = array<i64: 64, 72>}, {pipeline_mode = #tpu.pipeline_mode<synchronous>, transform_indices = @transform_1, window_bounds = array<i64: 72, 128>}, {pipeline_mode = #tpu.pipeline_mode<synchronous>, transform_indices = @transform_2, window_bounds = array<i64: 1, 128>}, {transform_indices = @transform_3, window_bounds = array<i64: 1>}, {transform_indices = @transform_4, window_bounds = array<i64: 64, 128>}, {transform_indices = @transform_5, window_bounds = array<i64: 64, 128>}]} {
    %c0 = arith.constant 0 : index
    %c0_0 = arith.constant 0 : index
    %0 = vector.load %arg1[%c0, %c0_0] : memref<64x72xbf16, #tpu.memory_space<vmem>>, vector<64x72xbf16>
    %c0_1 = arith.constant 0 : index
    %c0_2 = arith.constant 0 : index
    %1 = vector.load %arg2[%c0_1, %c0_2] : memref<72x128xbf16, #tpu.memory_space<vmem>>, vector<72x128xbf16>
    %cst = arith.constant dense<0.000000e+00> : vector<64x128xf32>
    %2 = tpu.matmul %0, %1, %cst {dimension_numbers = #tpu.dot_dimension_numbers<[1], [0], [0], [1], [0, 0, 1, 1], [], []>} : vector<64x72xbf16>, vector<72x128xbf16>, vector<64x128xf32> -> vector<64x128xf32>
    %c0_3 = arith.constant 0 : index
    %c0_4 = arith.constant 0 : index
    %3 = vector.load %arg3[%c0_3, %c0_4] : memref<1x128xf32, #tpu.memory_space<vmem>>, vector<1x128xf32>
    %4 = vector.broadcast %3 : vector<1x128xf32> to vector<64x128xf32>
    %5 = arith.addf %2, %4 : vector<64x128xf32>
    %c0_5 = arith.constant 0 : index
    %6 = memref.load %arg4[%c0_5] : memref<1xf32, #tpu.memory_space<smem>>
    %cst_6 = arith.constant 0.000000e+00 : f32
    %7 = vector.broadcast %cst_6 : f32 to vector<64x128xf32>
    %8 = arith.cmpf oge, %5, %7 : vector<64x128xf32>
    %9 = vector.broadcast %6 : f32 to vector<64x128xf32>
    %10 = arith.mulf %9, %5 : vector<64x128xf32>
    %11 = arith.select %8, %5, %10 : vector<64x128xi1>, vector<64x128xf32>
    %c0_7 = arith.constant 0 : index
    %c0_8 = arith.constant 0 : index
    %12 = vector.load %arg5[%c0_7, %c0_8] : memref<64x128xbf16, #tpu.memory_space<vmem>>, vector<64x128xbf16>
    %13 = arith.extf %12 : vector<64x128xbf16> to vector<64x128xf32>
    %14 = arith.addf %11, %13 : vector<64x128xf32>
    %c0_9 = arith.constant 0 : index
    %c0_10 = arith.constant 0 : index
    %15 = vector.load %arg6[%c0_9, %c0_10] : memref<64x128xf32, #tpu.memory_space<vmem>>, vector<64x128xf32>
    tpu.vector_store %arg6[%c0_9, %c0_10], %14 {strides = array<i32>} : memref<64x128xf32, #tpu.memory_space<vmem>>, vector<64x128xf32>,
    return
  }
  func.func @transform_0(%arg0: i32) -> (i32, i32) {
    %c0_i32 = arith.constant 0 : i32
    %c0_i32_0 = arith.constant 0 : i32
    return %arg0, %c0_i32 : i32, i32
  }
  func.func @transform_1(%arg0: i32) -> (i32, i32) {
    %c0_i32 = arith.constant 0 : i32
    %c0_i32_0 = arith.constant 0 : i32
    %c0_i32_1 = arith.constant 0 : i32
    return %c0_i32, %c0_i32_0 : i32, i32
  }
  func.func @transform_2(%arg0: i32) -> (i32, i32) {
    %c0_i32 = arith.constant 0 : i32
    %c0_i32_0 = arith.constant 0 : i32
    %c0_i32_1 = arith.constant 0 : i32
    return %c0_i32, %c0_i32_0 : i32, i32
  }
  func.func @transform_3(%arg0: i32) -> i32 {
    %c0_i32 = arith.constant 0 : i32
    %c0_i32_0 = arith.constant 0 : i32
    return %c0_i32 : i32
  }
  func.func @transform_4(%arg0: i32) -> (i32, i32) {
    %c0_i32 = arith.constant 0 : i32
    %c0_i32_0 = arith.constant 0 : i32
    return %arg0, %c0_i32 : i32, i32
  }
  func.func @transform_5(%arg0: i32) -> (i32, i32) {
    %c0_i32 = arith.constant 0 : i32
    %c0_i32_0 = arith.constant 0 : i32
    return %arg0, %c0_i32 : i32, i32
  }
}

</mosaic_0001>

<bundles_post_ra>
// kernel: up_block_forward.3
= control target key start
LH: loop header
LB: loop body
LE: loop exit
PB: predicated region body
PF: predicated region fallthrough
CT: control target
= control target key end

     0   :  { %s634_s17 = smov 0   ;;  %s682_s0 = inlined_call_operand.vmem [shape: bf16[128,72], index: 0, kind: input, shape index: {}]   ;;  %s683_s1 = inlined_call_operand.vmem [shape: bf16[72,128], index: 1, kind: input, shape index: {}]   ;;  %s684_s2 = inlined_call_operand.vmem [shape: f32[1,128], index: 2, kind: input, shape index: {}]   ;;  %s685_s3 = inlined_call_operand.<no memory space> [shape: f32[1], index: 3, kind: input, shape index: {}]   ;;  %s686_s4 = inlined_call_operand.vmem [shape: bf16[128,128], index: 4, kind: output, shape index: {}]  }
   0x1   :  { %9 = sst [smem:[#allocation2]] %s685_s3 }
   0x2 LB: > { %s478_s18 = sadd.s32 4294967295, %s604_s17   ;;  %p482_p0 = scmp.ge.s32.totalorder %s604_s17, 1  ;;  %s604_s17 = sphi %s634_s17, %s15_s17  }
   0x3   : > { %p164_p1 = scmp.lt.s32.totalorder %s604_s17, 3 }
   0x5   : > { %p165_p2 = pnand %p482_p0, %p164_p1 }
   0x6   : > { %v589_v0 = vld [vmem:[%s683_s1] sm:$0xff] (!%p165_p2)   ;;  %v590_v1 = vld [vmem:[%s683_s1 + $0x8] sm:$0xff] (!%p165_p2)   ;;  %s483_s22 = sshll.u32 (!%p165_p2), %s478_s18, 3  ;;  %v591_v2 = vld [vmem:[%s683_s1 + $0x10] sm:$0xff] (!%p165_p2)   ;;  %vm274_vm0 = vcmask (!%p165_p2), 588800   ;;  %vm287_vm1 = vcmask (!%p165_p2), 1043456  }
   0x7   : > { %168 = sbr.rel (%p165_p2) target bundleno = 252 (0xfc), region = 36  ;;  %551 = vmatprep.subr.bf16.mxu0 (!%p165_p2), %v589_v0  ;;  %569 = vmatprep.subr.bf16.mxu1 (!%p165_p2), %v589_v0  ;;  %p191_p3 = scmp.lt.s32.totalorder (!%p165_p2), %s483_s22, 15  ;;  %v592_v3 = vld [vmem:[%s683_s1 + $0x18] sm:$0xff] (!%p165_p2)   ;;  %v593_v6 = vld [vmem:[%s683_s1 + $0x20] ss:$0 sps:$4 sm:$0xff] (!%p165_p2)  }
   0x8   : > { %552 = vmatpush3.bf16.msra.mxu0 (!%p165_p2), %v589_v0  ;;  %574 = vmatpush3.bf16.msra.mxu1 (!%p165_p2), %v589_v0  ;;  %v289_v7 = vsel (!%p165_p2), %vm287_vm1, %v593_v6, 0  ;;  %s356_s7 = sld [smem:[#allocation2]] (!%p165_p2)  ;;  %v487_v10 = vld [vmem:[%s684_s2] ss:$0 sm:$0xff] (!%p165_p2) }
   0x9   : > { %553 = vmatprep.subr.bf16.mxu0 (!%p165_p2), %v590_v1  ;;  %570 = vmatprep.subr.bf16.mxu1 (!%p165_p2), %v590_v1 }
   0xc   : > { %554 = vmatpush3.bf16.msra.mxu0 (!%p165_p2), %v590_v1  ;;  %575 = vmatpush3.bf16.msra.mxu1 (!%p165_p2), %v590_v1 }
   0xd   : > { %555 = vmatprep.subr.bf16.mxu0 (!%p165_p2), %v591_v2  ;;  %571 = vmatprep.subr.bf16.mxu1 (!%p165_p2), %v591_v2 }
   0xe   : > { %s688_s22 = smov (!%p191_p3, %s483_s22), 15  ;;  %v365_v12 = vstv %s356_s7 }
   0xf   : > { %s484_s25 = sshll.u32 %s688_s22, 2 }
  0x10   : > { %s194_s30 = scalar_lea.vmem %s682_s0, %s484_s25  ;;  %556 = vmatpush3.bf16.msra.mxu0 %v591_v2  ;;  %576 = vmatpush3.bf16.msra.mxu1 %v591_v2  ;;  %s200_s12 = scalar_lea.vmem %s686_s4, %s484_s25 }
  0x11   : > { %v594_v4 = vld [vmem:[%s194_s30] sm:$0xff]   ;;  %v595_v5 = vld [vmem:[%s194_s30 + $0x10] sm:$0xff]   ;;  %557 = vmatprep.subr.bf16.mxu0 %v592_v3  ;;  %572 = vmatprep.subr.bf16.mxu1 %v592_v3  ;;  %v596_v8 = vld [vmem:[%s194_s30 + $0x8] sm:$0xff]  }
  0x12   : > { %561 = vmatprep.mubr.msk.bf16.mxu0 %vm274_vm0, %v594_v4  ;;  %565 = vmatprep.mubr.msk.bf16.mxu1 %vm274_vm0, %v595_v5  ;;  %v597_v9 = vld [vmem:[%s194_s30 + $0x18] sm:$0xff]  }
  0x14   : > { %558 = vmatpush3.bf16.msra.mxu0 %v592_v3  ;;  %577 = vmatpush3.bf16.msra.mxu1 %v592_v3 }
  0x15   : > { %579 = vmatprep.subr.msk.bf16.mxu0 %vm287_vm1, %v593_v6  ;;  %580 = vmatprep.subr.msk.bf16.mxu1 %vm287_vm1, %v593_v6 }
  0x18   : > { %560 = vmatpush3.bf16.msra.mxu0 %v289_v7  ;;  %578 = vmatpush3.bf16.msra.mxu1 %v289_v7 }
  0x1b   : > { %562 = vmatmul.mubr.msk.bf16.vlgmr.msra.gmra.mrb[0].mxu0 %vm274_vm0, %v596_v8  ;;  %566 = vmatmul.mubr.msk.bf16.vlgmr.msra.gmra.mrb[0].mxu1 %vm274_vm0, %v597_v9 }
  0xee   : > { %v563_v11 = vpop.f32.mrb[0].mxu0  ;;  %v567_v13 = vpop.f32.mrb[0].mxu1 }
  0xef   : > { %v334_v14 = vadd.f32 %v563_v11, %v487_v10  ;;  %v350_v15 = vadd.f32 %v567_v13, %v487_v10  ;;  %v325_v16 = vpop.f32.mrb[1].mxu0  ;;  %v341_v17 = vpop.f32.mrb[1].mxu1 }
  0xf0   : > { %v326_v18 = vadd.f32 %v487_v10, %v325_v16  ;;  %v342_v19 = vadd.f32 %v487_v10, %v341_v17  ;;  %v564_v20 = vpop.f32.mrb[2].mxu0  ;;  %v568_v21 = vpop.f32.mrb[2].mxu1 }
  0xf1   : > { %vm359_vm2 = vcmp.ge.f32.partialorder %v334_v14, 0.0  ;;  %v368_v22 = vmul.f32 %v365_v12, %v334_v14  ;;  %vm363_vm3 = vcmp.ge.f32.partialorder %v350_v15, 0.0  ;;  %v372_v23 = vmul.f32 %v365_v12, %v350_v15  ;;  %v328_v24 = vpop.f32.mrb[3].mxu0  ;;  %v344_v25 = vpop.f32.mrb[3].mxu1 }
  0xf2   : > { %vm357_vm4 = vcmp.ge.f32.partialorder %v326_v18, 0.0  ;;  %v366_v26 = vmul.f32 %v365_v12, %v326_v18  ;;  %vm361_vm5 = vcmp.ge.f32.partialorder %v342_v19, 0.0  ;;  %v370_v27 = vmul.f32 %v365_v12, %v342_v19 }
  0xf3   : > { %v337_v28 = vadd.f32 %v564_v20, %v487_v10  ;;  %v353_v29 = vadd.f32 %v568_v21, %v487_v10  ;;  %v376_v30 = vsel %vm359_vm2, %v334_v14, %v368_v22  ;;  %v380_v31 = vsel %vm363_vm3, %v350_v15, %v372_v23 }
  0xf4   : > { %v329_v32 = vadd.f32 %v487_v10, %v328_v24  ;;  %v345_v33 = vadd.f32 %v487_v10, %v344_v25  ;;  %v374_v38 = vsel %vm357_vm4, %v326_v18, %v366_v26  ;;  %v378_v39 = vsel %vm361_vm5, %v342_v19, %v370_v27 }
  0xf5   : > { %vm360_vm6 = vcmp.ge.f32.partialorder %v337_v28, 0.0  ;;  %v369_v34 = vmul.f32 %v365_v12, %v337_v28  ;;  %vm364_vm7 = vcmp.ge.f32.partialorder %v353_v29, 0.0  ;;  %v373_v35 = vmul.f32 %v365_v12, %v353_v29 }
  0xf6   : > { %vm358_vm8 = vcmp.ge.f32.partialorder %v329_v32, 0.0  ;;  %v367_v36 = vmul.f32 %v365_v12, %v329_v32  ;;  %vm362_vm9 = vcmp.ge.f32.partialorder %v345_v33, 0.0  ;;  %v371_v37 = vmul.f32 %v365_v12, %v345_v33 }
  0xf7   : > { %v377_v40 = vsel %vm360_vm6, %v337_v28, %v369_v34  ;;  %v381_v41 = vsel %vm364_vm7, %v353_v29, %v373_v35 }
  0xf8   : > { %v527_v42 = vpack.c.bf16 %v377_v40, %v376_v30  ;;  %v537_v43 = vpack.c.bf16 %v381_v41, %v380_v31  ;;  %v375_v44 = vsel %vm358_vm8, %v329_v32, %v367_v36  ;;  %v379_v45 = vsel %vm362_vm9, %v345_v33, %v371_v37 }
  0xf9   : > { %v522_v46 = vpack.c.bf16 %v375_v44, %v374_v38  ;;  %v532_v47 = vpack.c.bf16 %v379_v45, %v378_v39 }
  0xfa   : > { %539 = vst [vmem:[%s200_s12 + $0x8] sm:$0xff] %v527_v42   ;;  %541 = vst [vmem:[%s200_s12 + $0x18] sm:$0xff] %v537_v43  }
  0xfb   : > { %523 = vst [vmem:[%s200_s12] sm:$0xff] %v522_v46   ;;  %540 = vst [vmem:[%s200_s12 + $0x10] sm:$0xff] %v532_v47  }
  0xfc PF: > { %s15_s17 = sadd.s32 1, %s604_s17  }
  0xfd   : > { %p12_p4 = scmp.ge.s32.totalorder %s15_s17, 4  }
  0xff   :  { %14 = sbr.rel (!%p12_p4) target bundleno = 2 (0x2), region = 66 }

// kernel: up_block_forward.4
= control target key start
LH: loop header
LB: loop body
LE: loop exit
PB: predicated region body
PF: predicated region fallthrough
CT: control target
= control target key end

     0   :  { %s1209_s20 = smov 0   ;;  %s1388_s0 = inlined_call_operand.vmem [shape: bf16[128,512], index: 0, kind: input, shape index: {}]   ;;  %s1389_s1 = inlined_call_operand.vmem [shape: bf16[512,128], index: 1, kind: input, shape index: {}]   ;;  %s1390_s2 = inlined_call_operand.vmem [shape: f32[1,128], index: 2, kind: input, shape index: {}]   ;;  %s1391_s3 = inlined_call_operand.<no memory space> [shape: f32[1], index: 3, kind: input, shape index: {}]   ;;  %s1392_s4 = inlined_call_operand.vmem [shape: bf16[128,128], index: 4, kind: input, shape index: {}]   ;;  %s1393_s5 = inlined_call_operand.vmem [shape: bf16[128,128], index: 5, kind: output, shape index: {}]  }
   0x1   :  { %10 = sst [smem:[#allocation2]] %s1391_s3 }
   0x2 LB: > { %s902_s21 = sadd.s32 4294967295, %s1174_s20   ;;  %p906_p0 = scmp.ge.s32.totalorder %s1174_s20, 1  ;;  %s1174_s20 = sphi %s1209_s20, %s16_s20  }
   0x3   : > { %p201_p1 = scmp.lt.s32.totalorder %s1174_s20, 3 }
   0x5   : > { %p202_p2 = pnand %p906_p0, %p201_p1 }
   0x6   : > { %v1112_v0 = vld [vmem:[%s1389_s1 + $0x40] sm:$0xff] (!%p202_p2)   ;;  %v1116_v4 = vld [vmem:[%s1389_s1 + $0x48] sm:$0xff] (!%p202_p2)   ;;  %v1120_v8 = vld [vmem:[%s1389_s1 + $0x50] sm:$0xff] (!%p202_p2)   ;;  %s907_s29 = sshll.u32 (!%p202_p2), %s902_s21, 3  ;;  %s744_s16 = sld [smem:[#allocation2]] (!%p202_p2) }
   0x7   : > { %205 = sbr.rel (%p202_p2) target bundleno = 293 (0x125), region = 40  ;;  %v1113_v1 = vld [vmem:[%s1389_s1 + $0xc0] sm:$0xff] (!%p202_p2)   ;;  %1024 = vmatprep.subr.bf16.mxu0 (!%p202_p2), %v1112_v0  ;;  %v1117_v5 = vld [vmem:[%s1389_s1 + $0xc8] sm:$0xff] (!%p202_p2)   ;;  %v1121_v9 = vld [vmem:[%s1389_s1 + $0xd0] sm:$0xff] (!%p202_p2)   ;;  %p236_p3 = scmp.lt.s32.totalorder (!%p202_p2), %s907_s29, 15 }
   0x8   : > { %v1114_v2 = vld [vmem:[%s1389_s1] sm:$0xff] (!%p202_p2)   ;;  %1064 = vmatprep.subr.bf16.mxu1 (!%p202_p2), %v1113_v1  ;;  %v1118_v6 = vld [vmem:[%s1389_s1 + $0x8] sm:$0xff] (!%p202_p2)   ;;  %v1122_v10 = vld [vmem:[%s1389_s1 + $0x10] sm:$0xff] (!%p202_p2)  }
   0x9   : > { %v1115_v3 = vld [vmem:[%s1389_s1 + $0x80] sm:$0xff] (!%p202_p2)   ;;  %1025 = vmatpush3.bf16.msra.mxu0 (!%p202_p2), %v1114_v2  ;;  %v1119_v7 = vld [vmem:[%s1389_s1 + $0x88] sm:$0xff] (!%p202_p2)   ;;  %v1123_v11 = vld [vmem:[%s1389_s1 + $0x90] sm:$0xff] (!%p202_p2)  }
   0xa   : > { %1065 = vmatpush3.bf16.msra.mxu1 (!%p202_p2), %v1115_v3  ;;  %1026 = vmatprep.subr.bf16.mxu0 (!%p202_p2), %v1116_v4  ;;  %v1124_v12 = vld [vmem:[%s1389_s1 + $0x58] sm:$0xff] (!%p202_p2)   ;;  %v1128_v16 = vld [vmem:[%s1389_s1 + $0x60] sm:$0xff] (!%p202_p2)   ;;  %v1132_v20 = vld [vmem:[%s1389_s1 + $0x68] sm:$0xff] (!%p202_p2)  }
   0xb   : > { %1066 = vmatprep.subr.bf16.mxu1 (!%p202_p2), %v1117_v5  ;;  %v1125_v13 = vld [vmem:[%s1389_s1 + $0xd8] sm:$0xff] (!%p202_p2)   ;;  %v1129_v17 = vld [vmem:[%s1389_s1 + $0xe0] sm:$0xff] (!%p202_p2)   ;;  %v1133_v21 = vld [vmem:[%s1389_s1 + $0xe8] sm:$0xff] (!%p202_p2)  }
   0xc   : > { %v1126_v14 = vld [vmem:[%s1389_s1 + $0x18] sm:$0xff] (!%p202_p2)   ;;  %v1130_v18 = vld [vmem:[%s1389_s1 + $0x20] sm:$0xff] (!%p202_p2)   ;;  %v1134_v22 = vld [vmem:[%s1389_s1 + $0x28] sm:$0xff] (!%p202_p2)   ;;  %v1353_v61 = vstv (!%p202_p2), %s744_s16 }
   0xd   : > { %1027 = vmatpush3.bf16.msra.mxu0 (!%p202_p2), %v1118_v6  ;;  %v1127_v15 = vld [vmem:[%s1389_s1 + $0x98] sm:$0xff] (!%p202_p2)   ;;  %v1131_v19 = vld [vmem:[%s1389_s1 + $0xa0] sm:$0xff] (!%p202_p2)   ;;  %v1135_v23 = vld [vmem:[%s1389_s1 + $0xa8] sm:$0xff] (!%p202_p2)  }
   0xe   : > { %1067 = vmatpush3.bf16.msra.mxu1 %v1119_v7  ;;  %1028 = vmatprep.subr.bf16.mxu0 %v1120_v8  ;;  %s1395_s29 = smov (!%p236_p3, %s907_s29), 15  ;;  %v1136_v24 = vld [vmem:[%s1389_s1 + $0x70] sm:$0xff]   ;;  %v1140_v28 = vld [vmem:[%s1389_s1 + $0x78] sm:$0xff]   ;;  %v1343_v50 = vld [vmem:[%s1390_s2] ss:$0 sm:$0xff] }
   0xf   : > { %1068 = vmatprep.subr.bf16.mxu1 %v1121_v9  ;;  %v1137_v25 = vld [vmem:[%s1389_s1 + $0xf0] sm:$0xff]   ;;  %s973_s27 = sshll.u32 %s1395_s29, 4  ;;  %v1141_v29 = vld [vmem:[%s1389_s1 + $0xf8] sm:$0xff]   ;;  %s911_s17 = sshll.u32 %s1395_s29, 2 }
  0x10   : > { %v1138_v26 = vld [vmem:[%s1389_s1 + $0x30] sm:$0xff]   ;;  %s1315_s12 = scalar_lea.vmem %s1388_s0, %s973_s27  ;;  %v1142_v30 = vld [vmem:[%s1389_s1 + $0x38] sm:$0xff]   ;;  %s1350_s3 = scalar_lea.vmem %s1392_s4, %s911_s17 }
  0x11   : > { %1029 = vmatpush3.bf16.msra.mxu0 %v1122_v10  ;;  %v1139_v27 = vld [vmem:[%s1389_s1 + $0xb0] sm:$0xff]   ;;  %v1143_v31 = vld [vmem:[%s1389_s1 + $0xb8] sm:$0xff]   ;;  %v983_v0 = vld [vmem:[%s1350_s3] sm:$0xff]   ;;  %s1365_s26 = scalar_lea.vmem %s1393_s5, %s911_s17 }
  0x12   : > { %1069 = vmatpush3.bf16.msra.mxu1 %v1123_v11  ;;  %1030 = vmatprep.subr.bf16.mxu0 %v1124_v12  ;;  %v1144_v32 = vld [vmem:[%s1315_s12] ss:$16 sps:$4 sm:$0xff]   ;;  %v1146_v33 = vld [vmem:[%s1315_s12 + $0x4] ss:$16 sps:$4 sm:$0xff]   ;;  %v1147_v34 = vld [vmem:[%s1315_s12 + $0x8] ss:$16 sps:$4 sm:$0xff]   ;;  %v984_v5 = vunpack.c.l.bf16 %v983_v0  ;;  %v985_v6 = vunpack.c.h.bf16 %v983_v0 }
  0x13   : > { %1070 = vmatprep.subr.bf16.mxu1 %v1125_v13  ;;  %v1149_v35 = vld [vmem:[%s1315_s12 + $0xc] ss:$16 sps:$4 sm:$0xff]   ;;  %646 = vmatprep.mubr.bf16.mxu0 %v1146_v33  ;;  %v1150_v36 = vld [vmem:[%s1315_s12 + $0x24] ss:$16 sps:$4 sm:$0xff]   ;;  %v1154_v38 = vld [vmem:[%s1315_s12 + $0x20] ss:$16 sps:$4 sm:$0xff]  }
  0x14   : > { %711 = vmatprep.mubr.bf16.mxu1 %v1149_v35  ;;  %v1152_v37 = vld [vmem:[%s1315_s12 + $0x2c] ss:$16 sps:$4 sm:$0xff]   ;;  %v1155_v39 = vld [vmem:[%s1315_s12 + $0x28] ss:$16 sps:$4 sm:$0xff]   ;;  %v1156_v40 = vld [vmem:[%s1315_s12 + $0x44] ss:$16 sps:$4 sm:$0xff]  }
  0x15   : > { %1031 = vmatpush3.bf16.msra.mxu0 %v1126_v14  ;;  %v1158_v41 = vld [vmem:[%s1315_s12 + $0x4c] ss:$16 sps:$4 sm:$0xff]   ;;  %v1160_v42 = vld [vmem:[%s1315_s12 + $0x40] ss:$16 sps:$4 sm:$0xff]   ;;  %v1161_v43 = vld [vmem:[%s1315_s12 + $0x48] ss:$16 sps:$4 sm:$0xff]  }
  0x16   : > { %1071 = vmatpush3.bf16.msra.mxu1 %v1127_v15  ;;  %1032 = vmatprep.subr.bf16.mxu0 %v1128_v16  ;;  %v1162_v44 = vld [vmem:[%s1315_s12 + $0x64] ss:$16 sps:$4 sm:$0xff]   ;;  %v1164_v45 = vld [vmem:[%s1315_s12 + $0x6c] ss:$16 sps:$4 sm:$0xff]   ;;  %v1166_v46 = vld [vmem:[%s1315_s12 + $0x60] ss:$16 sps:$4 sm:$0xff]  }
  0x17   : > { %1072 = vmatprep.subr.bf16.mxu1 %v1129_v17  ;;  %v1167_v47 = vld [vmem:[%s1315_s12 + $0x68] ss:$16 sps:$4 sm:$0xff]  }
  0x19   : > { %1033 = vmatpush3.bf16.msra.mxu0 %v1130_v18 }
  0x1a   : > { %1073 = vmatpush3.bf16.msra.mxu1 %v1131_v19  ;;  %1034 = vmatprep.subr.bf16.mxu0 %v1132_v20 }
  0x1b   : > { %1074 = vmatprep.subr.bf16.mxu1 %v1133_v21 }
  0x1d   : > { %1035 = vmatpush3.bf16.msra.mxu0 %v1134_v22 }
  0x1e   : > { %1075 = vmatpush3.bf16.msra.mxu1 %v1135_v23  ;;  %1036 = vmatprep.subr.bf16.mxu0 %v1136_v24 }
  0x1f   : > { %1076 = vmatprep.subr.bf16.mxu1 %v1137_v25  ;;  %v1018_v25 = vld [vmem:[%s1350_s3 + $0x8] sm:$0xff]  }
  0x21   : > { %1037 = vmatpush3.bf16.msra.mxu0 %v1138_v26 }
  0x22   : > { %1077 = vmatpush3.bf16.msra.mxu1 %v1139_v27  ;;  %1038 = vmatprep.subr.bf16.mxu0 %v1140_v28 }
  0x23   : > { %1078 = vmatprep.subr.bf16.mxu1 %v1141_v29 }
  0x25   : > { %1039 = vmatpush3.bf16.msra.mxu0 %v1142_v30 }
  0x26   : > { %1079 = vmatpush3.bf16.msra.mxu1 %v1143_v31  ;;  %v988_v31 = vunpack.c.l.bf16 %v1018_v25 }
  0x28   : > { %647 = vmatmul.mubr.bf16.vlgmr.msra.gmra.mrb[0].mxu0 %v1144_v32  ;;  %v989_v32 = vunpack.c.h.bf16 %v1018_v25 }
  0x29   : > { %712 = vmatmul.mubr.bf16.vlgmr.msra.gmra.mrb[0].mxu1 %v1147_v34  ;;  %654 = vmatprep.mubr.bf16.mxu0 %v1150_v36 }
  0x2a   : > { %719 = vmatprep.mubr.bf16.mxu1 %v1152_v37 }
  0x30   : > { %655 = vmatmul.mubr.bf16.gmra.mrb[4].mxu0 %v1154_v38 }
  0x31   : > { %720 = vmatmul.mubr.bf16.gmra.mrb[4].mxu1 %v1155_v39  ;;  %662 = vmatprep.mubr.bf16.mxu0 %v1156_v40 }
  0x32   : > { %727 = vmatprep.mubr.bf16.mxu1 %v1158_v41 }
  0x38   : > { %663 = vmatmul.mubr.bf16.gmra.mrb[8].mxu0 %v1160_v42 }
  0x39   : > { %728 = vmatmul.mubr.bf16.gmra.mrb[8].mxu1 %v1161_v43  ;;  %670 = vmatprep.mubr.bf16.mxu0 %v1162_v44 }
  0x3a   : > { %735 = vmatprep.mubr.bf16.mxu1 %v1164_v45 }
  0x40   : > { %671 = vmatmul.mubr.bf16.gmra.mrb[12].mxu0 %v1166_v46 }
  0x41   : > { %736 = vmatmul.mubr.bf16.gmra.mrb[12].mxu1 %v1167_v47 }
  0xfb   : > { %v1040_v48 = vpop.f32.mrb[0].mxu0 }
  0xfc   : > { %v1080_v49 = vpop.f32.mrb[0].mxu1  ;;  %v1041_v51 = vpop.f32.mrb[1].mxu0 }
  0xfd   : > { %v1042_v52 = vadd.f32 %v1041_v51, %v1040_v48  ;;  %v1081_v53 = vpop.f32.mrb[1].mxu1  ;;  %v1043_v54 = vpop.f32.mrb[2].mxu0 }
  0xfe   : > { %v1082_v55 = vadd.f32 %v1081_v53, %v1080_v49  ;;  %v1083_v56 = vpop.f32.mrb[2].mxu1  ;;  %v1044_v57 = vpop.f32.mrb[3].mxu0 }
  0xff   : > { %v649_v58 = vadd.f32 %v1042_v52, %v1343_v50  ;;  %v1045_v59 = vadd.f32 %v1044_v57, %v1043_v54  ;;  %v1084_v60 = vpop.f32.mrb[3].mxu1  ;;  %v1019_v52 = vld [vmem:[%s1350_s3 + $0x10] sm:$0xff]  }
 0x100   : > { %v1085_v62 = vadd.f32 %v1084_v60, %v1083_v56 }
 0x101   : > { %v714_v63 = vadd.f32 %v1082_v55, %v649_v58  ;;  %v652_v1 = vadd.f32 %v1045_v59, %v1343_v50  ;;  %v992_v58 = vunpack.c.l.bf16 %v1019_v52  ;;  %v993_v59 = vunpack.c.h.bf16 %v1019_v52 }
 0x103   : > { %vm745_vm0 = vcmp.ge.f32.partialorder %v714_v63, 0.0  ;;  %v754_v2 = vmul.f32 %v1353_v61, %v714_v63  ;;  %v717_v3 = vadd.f32 %v1085_v62, %v652_v1  ;;  %v1046_v4 = vpop.f32.mrb[4].mxu0 }
 0x104   : > { %v1086_v7 = vpop.f32.mrb[4].mxu1  ;;  %v1047_v8 = vpop.f32.mrb[5].mxu0 }
 0x105   : > { %v762_v9 = vsel %vm745_vm0, %v714_v63, %v754_v2  ;;  %vm746_vm1 = vcmp.ge.f32.partialorder %v717_v3, 0.0  ;;  %v755_v10 = vmul.f32 %v1353_v61, %v717_v3  ;;  %v1048_v11 = vadd.f32 %v1047_v8, %v1046_v4  ;;  %v1087_v12 = vpop.f32.mrb[5].mxu1  ;;  %v1049_v13 = vpop.f32.mrb[6].mxu0 }
 0x106   : > { %v1088_v14 = vadd.f32 %v1087_v12, %v1086_v7  ;;  %v1089_v15 = vpop.f32.mrb[6].mxu1  ;;  %v1050_v16 = vpop.f32.mrb[7].mxu0  ;;  %v786_v21 = vsub.f32 %v762_v9, %v984_v5 }
 0x107   : > { %v763_v17 = vsel %vm746_vm1, %v717_v3, %v755_v10  ;;  %v657_v18 = vadd.f32 %v1048_v11, %v1343_v50  ;;  %v1051_v19 = vadd.f32 %v1050_v16, %v1049_v13  ;;  %v1090_v20 = vpop.f32.mrb[7].mxu1 }
 0x108   : > { %v787_v22 = vsub.f32 %v763_v17, %v985_v6  ;;  %v1091_v23 = vadd.f32 %v1090_v20, %v1089_v15  ;;  %v1020_v15 = vld [vmem:[%s1350_s3 + $0x18] sm:$0xff]  }
 0x109   : > { %v722_v24 = vadd.f32 %v1088_v14, %v657_v18  ;;  %v660_v26 = vadd.f32 %v1051_v19, %v1343_v50  ;;  %v996_v20 = vunpack.c.l.bf16 %v1020_v15 }
 0x10a   : > { %v1001_v27 = vpack.c.bf16 %v787_v22, %v786_v21  ;;  %v997_v21 = vunpack.c.h.bf16 %v1020_v15 }
 0x10b   : > { %vm747_vm2 = vcmp.ge.f32.partialorder %v722_v24, 0.0  ;;  %v756_v28 = vmul.f32 %v1353_v61, %v722_v24  ;;  %v725_v29 = vadd.f32 %v1091_v23, %v660_v26  ;;  %v1052_v30 = vpop.f32.mrb[8].mxu0 }
 0x10c   : > { %1002 = vst [vmem:[%s1365_s26] sm:$0xff] %v1001_v27   ;;  %v1092_v33 = vpop.f32.mrb[8].mxu1  ;;  %v1053_v34 = vpop.f32.mrb[9].mxu0 }
 0x10d   : > { %v764_v35 = vsel %vm747_vm2, %v722_v24, %v756_v28  ;;  %vm748_vm3 = vcmp.ge.f32.partialorder %v725_v29, 0.0  ;;  %v757_v36 = vmul.f32 %v1353_v61, %v725_v29  ;;  %v1054_v37 = vadd.f32 %v1053_v34, %v1052_v30  ;;  %v1093_v38 = vpop.f32.mrb[9].mxu1  ;;  %v1055_v39 = vpop.f32.mrb[10].mxu0 }
 0x10e   : > { %v1094_v40 = vadd.f32 %v1093_v38, %v1092_v33  ;;  %v1095_v41 = vpop.f32.mrb[10].mxu1  ;;  %v1056_v42 = vpop.f32.mrb[11].mxu0  ;;  %v788_v47 = vsub.f32 %v764_v35, %v988_v31 }
 0x10f   : > { %v765_v43 = vsel %vm748_vm3, %v725_v29, %v757_v36  ;;  %v665_v44 = vadd.f32 %v1054_v37, %v1343_v50  ;;  %v1057_v45 = vadd.f32 %v1056_v42, %v1055_v39  ;;  %v1096_v46 = vpop.f32.mrb[11].mxu1 }
 0x110   : > { %v789_v48 = vsub.f32 %v765_v43, %v989_v32  ;;  %v1097_v49 = vadd.f32 %v1096_v46, %v1095_v41 }
 0x111   : > { %v730_v51 = vadd.f32 %v1094_v40, %v665_v44  ;;  %v668_v53 = vadd.f32 %v1057_v45, %v1343_v50 }
 0x112   : > { %v1006_v54 = vpack.c.bf16 %v789_v48, %v788_v47 }
 0x113   : > { %vm749_vm4 = vcmp.ge.f32.partialorder %v730_v51, 0.0  ;;  %v758_v55 = vmul.f32 %v1353_v61, %v730_v51  ;;  %v733_v56 = vadd.f32 %v1097_v49, %v668_v53  ;;  %v1058_v57 = vpop.f32.mrb[12].mxu0 }
 0x114   : > { %1021 = vst [vmem:[%s1365_s26 + $0x8] sm:$0xff] %v1006_v54   ;;  %v1098_v60 = vpop.f32.mrb[12].mxu1  ;;  %v1059_v62 = vpop.f32.mrb[13].mxu0 }
 0x115   : > { %v766_v63 = vsel %vm749_vm4, %v730_v51, %v758_v55  ;;  %vm750_vm5 = vcmp.ge.f32.partialorder %v733_v56, 0.0  ;;  %v759_v0 = vmul.f32 %v1353_v61, %v733_v56  ;;  %v1060_v1 = vadd.f32 %v1059_v62, %v1058_v57  ;;  %v1099_v2 = vpop.f32.mrb[13].mxu1  ;;  %v1061_v3 = vpop.f32.mrb[14].mxu0 }
 0x116   : > { %v1100_v4 = vadd.f32 %v1099_v2, %v1098_v60  ;;  %v1101_v5 = vpop.f32.mrb[14].mxu1  ;;  %v1062_v6 = vpop.f32.mrb[15].mxu0  ;;  %v790_v11 = vsub.f32 %v766_v63, %v992_v58 }
 0x117   : > { %v767_v7 = vsel %vm750_vm5, %v733_v56, %v759_v0  ;;  %v673_v8 = vadd.f32 %v1060_v1, %v1343_v50  ;;  %v1063_v9 = vadd.f32 %v1062_v6, %v1061_v3  ;;  %v1102_v10 = vpop.f32.mrb[15].mxu1 }
 0x118   : > { %v791_v12 = vsub.f32 %v767_v7, %v993_v59  ;;  %v1103_v13 = vadd.f32 %v1102_v10, %v1101_v5 }
 0x119   : > { %v738_v14 = vadd.f32 %v1100_v4, %v673_v8  ;;  %v676_v16 = vadd.f32 %v1063_v9, %v1343_v50 }
 0x11a   : > { %v1011_v17 = vpack.c.bf16 %v791_v12, %v790_v11 }
 0x11b   : > { %vm751_vm6 = vcmp.ge.f32.partialorder %v738_v14, 0.0  ;;  %v760_v18 = vmul.f32 %v1353_v61, %v738_v14  ;;  %v741_v19 = vadd.f32 %v1103_v13, %v676_v16 }
 0x11c   : > { %1022 = vst [vmem:[%s1365_s26 + $0x10] sm:$0xff] %v1011_v17  }
 0x11d   : > { %v768_v22 = vsel %vm751_vm6, %v738_v14, %v760_v18  ;;  %vm752_vm7 = vcmp.ge.f32.partialorder %v741_v19, 0.0  ;;  %v761_v23 = vmul.f32 %v1353_v61, %v741_v19 }
 0x11e   : > { %v792_v25 = vsub.f32 %v768_v22, %v996_v20 }
 0x11f   : > { %v769_v24 = vsel %vm752_vm7, %v741_v19, %v761_v23 }
 0x120   : > { %v793_v26 = vsub.f32 %v769_v24, %v997_v21 }
 0x122   : > { %v1016_v27 = vpack.c.bf16 %v793_v26, %v792_v25 }
 0x124   : > { %1023 = vst [vmem:[%s1365_s26 + $0x18] sm:$0xff] %v1016_v27  }
 0x125 PF: > { %s16_s20 = sadd.s32 1, %s1174_s20  }
 0x126   : > { %p13_p4 = scmp.ge.s32.totalorder %s16_s20, 4  }
 0x128   :  { %15 = sbr.rel (!%p13_p4) target bundleno = 2 (0x2), region = 73 }

// kernel: up_block_forward.5
= control target key start
LH: loop header
LB: loop body
LE: loop exit
PB: predicated region body
PF: predicated region fallthrough
CT: control target
= control target key end

     0   :  { %s674_s20 = smov 0   ;;  %s742_s0 = inlined_call_operand.vmem [shape: bf16[128,72], index: 0, kind: input, shape index: {}]   ;;  %s743_s1 = inlined_call_operand.vmem [shape: bf16[72,128], index: 1, kind: input, shape index: {}]   ;;  %s744_s2 = inlined_call_operand.vmem [shape: f32[1,128], index: 2, kind: input, shape index: {}]   ;;  %s745_s3 = inlined_call_operand.<no memory space> [shape: f32[1], index: 3, kind: input, shape index: {}]   ;;  %s746_s4 = inlined_call_operand.vmem [shape: bf16[128,128], index: 4, kind: input, shape index: {}]   ;;  %s747_s5 = inlined_call_operand.vmem [shape: f32[128,128], index: 5, kind: output, shape index: {}]  }
   0x1   :  { %10 = sst [smem:[#allocation2]] %s745_s3 }
   0x2 LB: > { %s531_s21 = sadd.s32 4294967295, %s639_s20   ;;  %p535_p0 = scmp.ge.s32.totalorder %s639_s20, 1  ;;  %s639_s20 = sphi %s674_s20, %s16_s20  }
   0x3   : > { %p200_p1 = scmp.lt.s32.totalorder %s639_s20, 3 }
   0x5   : > { %p201_p2 = pnand %p535_p0, %p200_p1 }
   0x6   : > { %v624_v0 = vld [vmem:[%s743_s1] sm:$0xff] (!%p201_p2)   ;;  %v625_v1 = vld [vmem:[%s743_s1 + $0x8] sm:$0xff] (!%p201_p2)   ;;  %s536_s25 = sshll.u32 (!%p201_p2), %s531_s21, 3  ;;  %v626_v2 = vld [vmem:[%s743_s1 + $0x10] sm:$0xff] (!%p201_p2)   ;;  %vm323_vm0 = vcmask (!%p201_p2), 588800   ;;  %vm336_vm1 = vcmask (!%p201_p2), 1043456  }
   0x7   : > { %204 = sbr.rel (%p201_p2) target bundleno = 255 (0xff), region = 40  ;;  %586 = vmatprep.subr.bf16.mxu0 (!%p201_p2), %v624_v0  ;;  %604 = vmatprep.subr.bf16.mxu1 (!%p201_p2), %v624_v0  ;;  %p234_p3 = scmp.lt.s32.totalorder (!%p201_p2), %s536_s25, 15  ;;  %v627_v3 = vld [vmem:[%s743_s1 + $0x18] sm:$0xff] (!%p201_p2)   ;;  %v628_v6 = vld [vmem:[%s743_s1 + $0x20] ss:$0 sps:$4 sm:$0xff] (!%p201_p2)  }
   0x8   : > { %587 = vmatpush3.bf16.msra.mxu0 (!%p201_p2), %v624_v0  ;;  %609 = vmatpush3.bf16.msra.mxu1 (!%p201_p2), %v624_v0  ;;  %v338_v7 = vsel (!%p201_p2), %vm336_vm1, %v628_v6, 0  ;;  %s405_s11 = sld [smem:[#allocation2]] (!%p201_p2)  ;;  %v542_v12 = vld [vmem:[%s744_s2] ss:$0 sm:$0xff] (!%p201_p2) }
   0x9   : > { %588 = vmatprep.subr.bf16.mxu0 (!%p201_p2), %v625_v1  ;;  %605 = vmatprep.subr.bf16.mxu1 (!%p201_p2), %v625_v1 }
   0xc   : > { %589 = vmatpush3.bf16.msra.mxu0 (!%p201_p2), %v625_v1  ;;  %610 = vmatpush3.bf16.msra.mxu1 (!%p201_p2), %v625_v1 }
   0xd   : > { %590 = vmatprep.subr.bf16.mxu0 (!%p201_p2), %v626_v2  ;;  %606 = vmatprep.subr.bf16.mxu1 (!%p201_p2), %v626_v2 }
   0xe   : > { %s749_s25 = smov (!%p234_p3, %s536_s25), 15  ;;  %v414_v16 = vstv %s405_s11 }
   0xf   : > { %s537_s28 = sshll.u32 %s749_s25, 2  ;;  %s541_s17 = sshll.u32 %s749_s25, 3 }
  0x10   : > { %s237_s8 = scalar_lea.vmem %s742_s0, %s537_s28  ;;  %591 = vmatpush3.bf16.msra.mxu0 %v626_v2  ;;  %611 = vmatpush3.bf16.msra.mxu1 %v626_v2  ;;  %s243_s14 = scalar_lea.vmem %s746_s4, %s537_s28 }
  0x11   : > { %v629_v4 = vld [vmem:[%s237_s8] sm:$0xff]   ;;  %v630_v5 = vld [vmem:[%s237_s8 + $0x10] sm:$0xff]   ;;  %592 = vmatprep.subr.bf16.mxu0 %v627_v3  ;;  %607 = vmatprep.subr.bf16.mxu1 %v627_v3  ;;  %v631_v8 = vld [vmem:[%s237_s8 + $0x8] sm:$0xff]   ;;  %s727_s21 = scalar_lea.vmem %s747_s5, %s541_s17 }
  0x12   : > { %596 = vmatprep.mubr.msk.bf16.mxu0 %vm323_vm0, %v629_v4  ;;  %600 = vmatprep.mubr.msk.bf16.mxu1 %vm323_vm0, %v630_v5  ;;  %v632_v9 = vld [vmem:[%s237_s8 + $0x18] sm:$0xff]   ;;  %v574_v10 = vld [vmem:[%s243_s14 + $0x8] sm:$0xff]   ;;  %v717_v13 = vld [vmem:[%s243_s14] sm:$0xff]  }
  0x13   : > { %v576_v11 = vld [vmem:[%s243_s14 + $0x18] sm:$0xff]   ;;  %v719_v14 = vld [vmem:[%s243_s14 + $0x10] sm:$0xff]   ;;  %v564_v17 = vunpack.c.l.bf16 %v574_v10  ;;  %v560_v23 = vunpack.c.l.bf16 %v717_v13  ;;  %v565_v29 = vunpack.c.h.bf16 %v574_v10  ;;  %v561_v53 = vunpack.c.h.bf16 %v717_v13 }
  0x14   : > { %593 = vmatpush3.bf16.msra.mxu0 %v627_v3  ;;  %612 = vmatpush3.bf16.msra.mxu1 %v627_v3  ;;  %v572_v19 = vunpack.c.l.bf16 %v576_v11  ;;  %v568_v25 = vunpack.c.l.bf16 %v719_v14  ;;  %v573_v31 = vunpack.c.h.bf16 %v576_v11  ;;  %v569_v54 = vunpack.c.h.bf16 %v719_v14 }
  0x15   : > { %614 = vmatprep.subr.msk.bf16.mxu0 %vm336_vm1, %v628_v6  ;;  %615 = vmatprep.subr.msk.bf16.mxu1 %vm336_vm1, %v628_v6 }
  0x18   : > { %595 = vmatpush3.bf16.msra.mxu0 %v338_v7  ;;  %613 = vmatpush3.bf16.msra.mxu1 %v338_v7 }
  0x1b   : > { %597 = vmatmul.mubr.msk.bf16.vlgmr.msra.gmra.mrb[0].mxu0 %vm323_vm0, %v631_v8  ;;  %601 = vmatmul.mubr.msk.bf16.vlgmr.msra.gmra.mrb[0].mxu1 %vm323_vm0, %v632_v9 }
  0xee   : > { %v598_v15 = vpop.f32.mrb[0].mxu0  ;;  %v602_v18 = vpop.f32.mrb[0].mxu1 }
  0xef   : > { %v383_v20 = vadd.f32 %v598_v15, %v542_v12  ;;  %v399_v21 = vadd.f32 %v602_v18, %v542_v12  ;;  %v374_v22 = vpop.f32.mrb[1].mxu0  ;;  %v390_v24 = vpop.f32.mrb[1].mxu1 }
  0xf0   : > { %v375_v26 = vadd.f32 %v542_v12, %v374_v22  ;;  %v391_v27 = vadd.f32 %v542_v12, %v390_v24  ;;  %v599_v28 = vpop.f32.mrb[2].mxu0  ;;  %v603_v30 = vpop.f32.mrb[2].mxu1 }
  0xf1   : > { %vm408_vm2 = vcmp.ge.f32.partialorder %v383_v20, 0.0  ;;  %v417_v32 = vmul.f32 %v414_v16, %v383_v20  ;;  %vm412_vm3 = vcmp.ge.f32.partialorder %v399_v21, 0.0  ;;  %v421_v33 = vmul.f32 %v414_v16, %v399_v21  ;;  %v377_v34 = vpop.f32.mrb[3].mxu0  ;;  %v393_v35 = vpop.f32.mrb[3].mxu1 }
  0xf2   : > { %vm406_vm4 = vcmp.ge.f32.partialorder %v375_v26, 0.0  ;;  %v415_v36 = vmul.f32 %v414_v16, %v375_v26  ;;  %vm410_vm5 = vcmp.ge.f32.partialorder %v391_v27, 0.0  ;;  %v419_v37 = vmul.f32 %v414_v16, %v391_v27 }
  0xf3   : > { %v425_v38 = vsel %vm408_vm2, %v383_v20, %v417_v32  ;;  %v429_v39 = vsel %vm412_vm3, %v399_v21, %v421_v33  ;;  %v386_v40 = vadd.f32 %v599_v28, %v542_v12  ;;  %v402_v41 = vadd.f32 %v603_v30, %v542_v12 }
  0xf4   : > { %v449_v42 = vadd.f32 %v564_v17, %v425_v38  ;;  %v453_v43 = vadd.f32 %v572_v19, %v429_v39  ;;  %v423_v44 = vsel %vm406_vm4, %v375_v26, %v415_v36  ;;  %v427_v45 = vsel %vm410_vm5, %v391_v27, %v419_v37 }
  0xf5   : > { %v447_v46 = vadd.f32 %v560_v23, %v423_v44  ;;  %v451_v47 = vadd.f32 %v568_v25, %v427_v45  ;;  %vm409_vm6 = vcmp.ge.f32.partialorder %v386_v40, 0.0  ;;  %v418_v48 = vmul.f32 %v414_v16, %v386_v40 }
  0xf6   : > { %457 = vst [vmem:[%s727_s21 + $0x10] sm:$0xff] %v449_v42  ;;  %461 = vst [vmem:[%s727_s21 + $0x30] sm:$0xff] %v453_v43  ;;  %vm413_vm7 = vcmp.ge.f32.partialorder %v402_v41, 0.0  ;;  %v422_v49 = vmul.f32 %v414_v16, %v402_v41  ;;  %v378_v50 = vadd.f32 %v542_v12, %v377_v34  ;;  %v394_v51 = vadd.f32 %v542_v12, %v393_v35 }
  0xf7   : > { %455 = vst [vmem:[%s727_s21] sm:$0xff] %v447_v46  ;;  %459 = vst [vmem:[%s727_s21 + $0x20] sm:$0xff] %v451_v47  ;;  %v426_v52 = vsel %vm409_vm6, %v386_v40, %v418_v48 }
  0xf8   : > { %v450_v55 = vadd.f32 %v565_v29, %v426_v52  ;;  %v430_v56 = vsel %vm413_vm7, %v402_v41, %v422_v49  ;;  %vm407_vm8 = vcmp.ge.f32.partialorder %v378_v50, 0.0  ;;  %v416_v57 = vmul.f32 %v414_v16, %v378_v50 }
  0xf9   : > { %v454_v58 = vadd.f32 %v573_v31, %v430_v56  ;;  %vm411_vm9 = vcmp.ge.f32.partialorder %v394_v51, 0.0  ;;  %v420_v59 = vmul.f32 %v414_v16, %v394_v51 }
  0xfa   : > { %458 = vst [vmem:[%s727_s21 + $0x18] sm:$0xff] %v450_v55  ;;  %v424_v60 = vsel %vm407_vm8, %v378_v50, %v416_v57 }
  0xfb   : > { %462 = vst [vmem:[%s727_s21 + $0x38] sm:$0xff] %v454_v58  ;;  %v448_v61 = vadd.f32 %v561_v53, %v424_v60  ;;  %v428_v62 = vsel %vm411_vm9, %v394_v51, %v420_v59 }
  0xfc   : > { %v452_v63 = vadd.f32 %v569_v54, %v428_v62 }
  0xfd   : > { %456 = vst [vmem:[%s727_s21 + $0x8] sm:$0xff] %v448_v61 }
  0xfe   : > { %460 = vst [vmem:[%s727_s21 + $0x28] sm:$0xff] %v452_v63 }
  0xff PF: > { %s16_s20 = sadd.s32 1, %s639_s20  }
 0x100   : > { %p13_p4 = scmp.ge.s32.totalorder %s16_s20, 4  }
 0x102   :  { %15 = sbr.rel (!%p13_p4) target bundleno = 2 (0x2), region = 73 }

</bundles_post_ra>
